<compile_context>
chip_gen: v5e
topology: v5e:2x2
jax: 0.10.0
libtpu: 0.0.40
codegen_flags: <defaults>
</compile_context>

<pallas_src>
import functools

import jax
import jax.numpy as jnp
import numpy as np
from jax import lax
from jax.experimental import pallas as pl
from jax.experimental.pallas import tpu as pltpu

BN_EPS = 1e-5
_VMEM_LIMIT_BYTES = 48 * 1024 * 1024      # safe on v5e/v6e (128 MiB) and v7x (64 MiB)
_TILE_BUDGET_BYTES = 2 * 1024 * 1024      # per-tile per-tensor budget (v7x friendly)


def _round_up(v, m):
    return (v + m - 1) // m * m


# ---------------------------------------------------------------------------
# In-kernel helpers
# ---------------------------------------------------------------------------
def _conv3_stack(x, w_packed, L, compute_dtype):
    """k=3, pad=1 conv over a channels-leading (C, T) slab, T = nb*L (whole batches).

    Taps x[l-1], x[l], x[l+1] are built with lane rolls (non-negative shifts) and stacked
    along the contraction axis, so the conv is a single (Co,3C)x(3C,T) matmul.  Columns with
    l == 0 / l == L-1 inside each length-L segment are zeroed (conv padding), which also
    removes the wrap-around columns the rolls drag across batch / tile boundaries.
    """
    _, T = x.shape
    pos = lax.broadcasted_iota(jnp.int32, (1, T), 1) % L          # hoisted boundary index
    xm1 = jnp.where(pos == 0, 0.0, pltpu.roll(x, shift=1, axis=1))        # x[l-1]
    xp1 = jnp.where(pos == L - 1, 0.0, pltpu.roll(x, shift=T - 1, axis=1))  # x[l+1]
    stacked = jnp.concatenate([xm1, x, xp1], axis=0)              # (3C, T), f32
    return jnp.dot(w_packed.astype(compute_dtype), stacked.astype(compute_dtype),
                   preferred_element_type=jnp.float32)            # (Co, T), f32 accum


def _write_channel_stats(y, sum_ref, sq_ref):
    """Per-tile, per-channel sum and sum-of-squares (single pass over y)."""
    sum_ref[...] = jnp.sum(y, axis=1, keepdims=True)[None]        # (1, Co, 1)
    sq_ref[...] = jnp.sum(y * y, axis=1, keepdims=True)[None]     # (1, Co, 1)


# ---------------------------------------------------------------------------
# Kernels (one grid step = one batch tile, lane-dense T = nb*L columns)
# ---------------------------------------------------------------------------
def _conv1_stats_kernel(x_ref, w1_ref, y1_ref, s_ref, q_ref, *, L, compute_dtype):
    # conv1 (no bias: BN cancels it) + BN1 partial statistics.
    y = _conv3_stack(x_ref[...], w1_ref[...], L, compute_dtype)
    y1_ref[...] = y
    _write_channel_stats(y, s_ref, q_ref)


def _bn_relu_conv2_stats_kernel(y1_ref, a1_ref, b1_ref, w2_ref, y2_ref, s_ref, q_ref,
                                *, L, compute_dtype):
    # Fused BN1 apply (one FMA) + ReLU + conv2 (no bias) + BN2 partial statistics.
    h = jnp.maximum(y1_ref[...] * a1_ref[...] + b1_ref[...], 0.0)
    y = _conv3_stack(h, w2_ref[...], L, compute_dtype)
    y2_ref[...] = y
    _write_channel_stats(y, s_ref, q_ref)


def _bn_add_relu_kernel(use_shortcut_conv, *refs, compute_dtype):
    # Fused BN2 apply + shortcut (1x1 conv or identity) + residual add + ReLU.
    if use_shortcut_conv:
        y2_ref, x_ref, a2_ref, b2_ref, ws_ref, bs_ref, o_ref = refs
        shortcut = jnp.dot(ws_ref[...].astype(compute_dtype), x_ref[...].astype(compute_dtype),
                           preferred_element_type=jnp.float32) + bs_ref[...]
    else:
        y2_ref, x_ref, a2_ref, b2_ref, o_ref = refs
        shortcut = x_ref[...]
    out = y2_ref[...] * a2_ref[...] + b2_ref[...] + shortcut
    o_ref[...] = jnp.maximum(out, 0.0)


# ---------------------------------------------------------------------------
# Host-side helpers
# ---------------------------------------------------------------------------
def _bn_scale_shift(part_sum, part_sq, gamma, beta, count):
    """Reduce per-tile stats and fuse BN into per-channel scale/shift (tiny XLA ops)."""
    s = jnp.sum(part_sum, axis=0)[:, 0]                 # (C,)
    q = jnp.sum(part_sq, axis=0)[:, 0]                  # (C,)
    mean = s / count
    var = jnp.maximum(q / count - mean * mean, 0.0)     # one-pass (biased) variance
    scale = gamma[:, 0] * lax.rsqrt(var + BN_EPS)
    shift = beta[:, 0] - mean * scale
    return scale[:, None], shift[:, None]               # (C, 1) each


def _pick_batch_tile(N, C, L):
    """Largest divisor of N whose (C, nb*L) f32 tile stays under the per-tensor budget."""
    per_batch = C * L * 4
    nb = max(1, min(N, _TILE_BUDGET_BYTES // max(per_batch, 1)))
    while N % nb:
        nb -= 1
    # Keep the tile's lane width a multiple of 128 (unmasked vst) unless that is impossible,
    # in which case fall back to the full column extent (block == full dim is always legal).
    if (nb * L) % 128 != 0 and nb != N:
        nb = N
    return nb


# ---------------------------------------------------------------------------
# Wrapper: three tiled pallas_calls (BN's global stats force two sync points)
# ---------------------------------------------------------------------------
def residual_block_forward(x, params, *, batch_tile=None, compute_dtype=jnp.bfloat16):
    """x: (N, Cin, L) float32.  params: dict of weights.  Returns (N, Cout, L) float32."""
    N, Ci, L = x.shape
    Co = params["w1"].shape[0]
    use_sc = "ws" in params

    Ci_p = _round_up(Ci, 8)
    Co_p = _round_up(Co, 8)

    # ---- host-side layout plumbing (free): channels-leading lane-dense slab + packed weights
    x2 = jnp.transpose(x, (1, 0, 2)).reshape(Ci, N * L)
    x2 = jnp.pad(x2, ((0, Ci_p - Ci), (0, 0)))

    w1 = jnp.pad(params["w1"], ((0, Co_p - Co), (0, Ci_p - Ci), (0, 0)))
    w1p = jnp.transpose(w1, (0, 2, 1)).reshape(Co_p, 3 * Ci_p)     # tap-major (Co, 3*Ci)
    w2 = jnp.pad(params["w2"], ((0, Co_p - Co), (0, Co_p - Co), (0, 0)))
    w2p = jnp.transpose(w2, (0, 2, 1)).reshape(Co_p, 3 * Co_p)
    g1 = jnp.pad(params["g1"], ((0, Co_p - Co), (0, 0)))
    be1 = jnp.pad(params["be1"], ((0, Co_p - Co), (0, 0)))
    g2 = jnp.pad(params["g2"], ((0, Co_p - Co), (0, 0)))
    be2 = jnp.pad(params["be2"], ((0, Co_p - Co), (0, 0)))
    if use_sc:
        wsp = jnp.pad(params["ws"][:, :, 0], ((0, Co_p - Co), (0, Ci_p - Ci)))
        bsp = jnp.pad(params["bs"], ((0, Co_p - Co), (0, 0)))

    nb = batch_tile if batch_tile is not None else _pick_batch_tile(N, max(Ci_p, Co_p), L)
    assert N % nb == 0, "batch tile must divide N"
    T = nb * L
    ntiles = N // nb
    grid = (ntiles,)

    cparams = pltpu.CompilerParams(
        dimension_semantics=("parallel",),            # shard batch tiles across v7x's 2 TCs
        vmem_limit_bytes=_VMEM_LIMIT_BYTES)

    def cols(c):   # tiled over the flattened (N*L) axis, full channel extent
        return pl.BlockSpec((c, T), lambda i: (0, i))

    def rep(shape):  # small replicated parameter, same block every step
        zeros = (0,) * len(shape)
        return pl.BlockSpec(shape, lambda i: zeros)

    stats_spec = pl.BlockSpec((1, Co_p, 1), lambda i: (i, 0, 0))
    stats_shape = jax.ShapeDtypeStruct((ntiles, Co_p, 1), jnp.float32)
    slab_shape = jax.ShapeDtypeStruct((Co_p, N * L), jnp.float32)

    # ---- pass 1: conv1 + per-tile BN1 stats
    y1, s1, q1 = pl.pallas_call(
        functools.partial(_conv1_stats_kernel, L=L, compute_dtype=compute_dtype),
        grid=grid,
        in_specs=[cols(Ci_p), rep((Co_p, 3 * Ci_p))],
        out_specs=[cols(Co_p), stats_spec, stats_spec],
        out_shape=[slab_shape, stats_shape, stats_shape],
        compiler_params=cparams,
    )(x2, w1p)
    a1, b1 = _bn_scale_shift(s1, q1, g1, be1, N * L)

    # ---- pass 2: BN1 apply + ReLU + conv2 + per-tile BN2 stats
    y2, s2, q2 = pl.pallas_call(
        functools.partial(_bn_relu_conv2_stats_kernel, L=L, compute_dtype=compute_dtype),
        grid=grid,
        in_specs=[cols(Co_p), rep((Co_p, 1)), rep((Co_p, 1)), rep((Co_p, 3 * Co_p))],
        out_specs=[cols(Co_p), stats_spec, stats_spec],
        out_shape=[slab_shape, stats_shape, stats_shape],
        compiler_params=cparams,
    )(y1, a1, b1, w2p)
    a2, b2 = _bn_scale_shift(s2, q2, g2, be2, N * L)

    # ---- pass 3: BN2 apply + shortcut + residual add + ReLU
    args = [y2, x2, a2, b2]
    in_specs = [cols(Co_p), cols(Ci_p), rep((Co_p, 1)), rep((Co_p, 1))]
    if use_sc:
        args += [wsp, bsp]
        in_specs += [rep((Co_p, Ci_p)), rep((Co_p, 1))]
    out2d = pl.pallas_call(
        functools.partial(_bn_add_relu_kernel, use_sc, compute_dtype=compute_dtype),
        grid=grid,
        in_specs=in_specs,
        out_specs=cols(Co_p),
        out_shape=slab_shape,
        compiler_params=cparams,
    )(*args)

    return jnp.transpose(out2d[:Co].reshape(Co, N, L), (1, 0, 2))


# ---------------------------------------------------------------------------
# Pure-JAX reference (mirrors the PyTorch forward) for correctness checking
# ---------------------------------------------------------------------------
def residual_block_ref(x, params):
    def conv1d(h, w, b, pad):
        y = lax.conv_general_dilated(
            h, w, window_strides=(1,), padding=[(pad, pad)],
            dimension_numbers=("NCH", "OIH", "NCH"),
            precision=lax.Precision.HIGHEST)
        return y + b.reshape(1, -1, 1)

    def bn(y, g, be):
        mean = jnp.mean(y, axis=(0, 2), keepdims=True)
        var = jnp.mean((y - mean) ** 2, axis=(0, 2), keepdims=True)
        return g.reshape(1, -1, 1) * (y - mean) * lax.rsqrt(var + BN_EPS) + be.reshape(1, -1, 1)

    out = jax.nn.relu(bn(conv1d(x, params["w1"], params["b1"], 1), params["g1"], params["be1"]))
    out = bn(conv1d(out, params["w2"], params["b2"], 1), params["g2"], params["be2"])
    shortcut = conv1d(x, params["ws"], params["bs"], 0) if "ws" in params else x
    return jax.nn.relu(out + shortcut)


# ---------------------------------------------------------------------------
# Deterministic parameter construction (PyTorch shapes)
# ---------------------------------------------------------------------------
def make_params(key, in_channels, out_channels):
    keys = jax.random.split(key, 8)
    p = {
        "w1": 0.3 * jax.random.normal(keys[0], (out_channels, in_channels, 3), jnp.float32),
        "b1": 0.1 * jax.random.normal(keys[1], (out_channels, 1), jnp.float32),
        "g1": 1.0 + 0.1 * jax.random.normal(keys[2], (out_channels, 1), jnp.float32),
        "be1": 0.1 * jax.random.normal(keys[3], (out_channels, 1), jnp.float32),
        "w2": 0.3 * jax.random.normal(keys[4], (out_channels, out_channels, 3), jnp.float32),
        "b2": 0.1 * jax.random.normal(keys[5], (out_channels, 1), jnp.float32),
        "g2": 1.0 + 0.1 * jax.random.normal(keys[6], (out_channels, 1), jnp.float32),
        "be2": 0.1 * jax.random.normal(keys[7], (out_channels, 1), jnp.float32),
    }
    if in_channels != out_channels:
        k1, k2 = jax.random.split(jax.random.fold_in(key, 99))
        p["ws"] = 0.3 * jax.random.normal(k1, (out_channels, in_channels, 1), jnp.float32)
        p["bs"] = 0.1 * jax.random.normal(k2, (out_channels, 1), jnp.float32)
    return p


if __name__ == "__main__":
    key = jax.random.PRNGKey(0)
    N, C_IN, C_OUT, L = 2, 4, 8, 128

    # Case 1: in_channels != out_channels -> 1x1-conv shortcut (bf16 MXU path).
    kx, kp = jax.random.split(key)
    x = jax.random.normal(kx, (N, C_IN, L), jnp.float32)
    params = make_params(kp, C_IN, C_OUT)
    out = jax.block_until_ready(residual_block_forward(x, params))
    ref = jax.block_until_ready(residual_block_ref(x, params))
    np.testing.assert_allclose(np.asarray(out), np.asarray(ref), rtol=5e-2, atol=5e-2)

    # Case 2: in_channels == out_channels -> identity shortcut (bf16 MXU path).
    kx2, kp2 = jax.random.split(jax.random.fold_in(key, 1))
    x2 = jax.random.normal(kx2, (N, C_OUT, L), jnp.float32)
    params2 = make_params(kp2, C_OUT, C_OUT)
    out2 = jax.block_until_ready(residual_block_forward(x2, params2))
    ref2 = jax.block_until_ready(residual_block_ref(x2, params2))
    np.testing.assert_allclose(np.asarray(out2), np.asarray(ref2), rtol=5e-2, atol=5e-2)

    # Case 3: f32 MXU operands and an explicit 2-step grid (batch_tile=1) -> tighter check,
    # exercises the cross-tile stats reduction path.
    out3 = jax.block_until_ready(
        residual_block_forward(x, params, batch_tile=1, compute_dtype=jnp.float32))
    np.testing.assert_allclose(np.asarray(out3), np.asarray(ref), rtol=2e-2, atol=2e-2)

    print("KERNEL_OK")
</pallas_src>

<mosaic_0001>
module attributes {stable_mosaic.version = 11 : i64} {
  func.func @_conv1_stats_kernel(%arg0: i32, %arg1: memref<8x256xf32, #tpu.memory_space<vmem>>, %arg2: memref<8x24xf32, #tpu.memory_space<vmem>>, %arg3: memref<8x256xf32, #tpu.memory_space<vmem>>, %arg4: memref<1x8x1xf32, #tpu.memory_space<vmem>>, %arg5: memref<1x8x1xf32, #tpu.memory_space<vmem>>) attributes {dimension_semantics = [#tpu.dimension_semantics<parallel>], iteration_bounds = array<i64: 1>, scalar_prefetch = 0 : i64, scratch_operands = 0 : i64, tpu.core_type = #tpu.core_type<tc>, window_params = [{transform_indices = @transform_0, window_bounds = array<i64: 8, 256>}, {pipeline_mode = #tpu.pipeline_mode<synchronous>, transform_indices = @transform_1, window_bounds = array<i64: 8, 24>}, {transform_indices = @transform_2, window_bounds = array<i64: 8, 256>}, {transform_indices = @transform_3, window_bounds = array<i64: 1, 8, 1>}, {transform_indices = @transform_4, window_bounds = array<i64: 1, 8, 1>}]} {
    %c0 = arith.constant 0 : index
    %c0_0 = arith.constant 0 : index
    %0 = vector.load %arg1[%c0, %c0_0] : memref<8x256xf32, #tpu.memory_space<vmem>>, vector<8x256xf32>
    %c0_1 = arith.constant 0 : index
    %c0_2 = arith.constant 0 : index
    %1 = vector.load %arg2[%c0_1, %c0_2] : memref<8x24xf32, #tpu.memory_space<vmem>>, vector<8x24xf32>
    %2 = tpu.iota {dimensions = array<i32: 1>} : vector<1x256xi32>
    %c128_i32 = arith.constant 128 : i32
    %c0_i32 = arith.constant 0 : i32
    %3 = arith.cmpi eq, %c128_i32, %c0_i32 : i32
    %c1_i32 = arith.constant 1 : i32
    %4 = arith.select %3, %c1_i32, %c128_i32 : i32
    %5 = vector.broadcast %4 : i32 to vector<1x256xi32>
    %6 = arith.remsi %2, %5 : vector<1x256xi32>
    %c0_i32_3 = arith.constant 0 : i32
    %7 = vector.broadcast %c0_i32_3 : i32 to vector<1x256xi32>
    %8 = arith.cmpi ne, %6, %7 : vector<1x256xi32>
    %c0_i32_4 = arith.constant 0 : i32
    %9 = vector.broadcast %c0_i32_4 : i32 to vector<1x256xi32>
    %10 = arith.cmpi slt, %6, %9 : vector<1x256xi32>
    %c0_i32_5 = arith.constant 0 : i32
    %11 = arith.cmpi slt, %4, %c0_i32_5 : i32
    %12 = vector.broadcast %11 : i1 to vector<1x256xi1>
    %13 = vector.broadcast %12 : vector<1x256xi1> to vector<1x256xi1>
    %14 = arith.xori %10, %13 : vector<1x256xi1>
    %15 = arith.andi %14, %8 : vector<1x256xi1>
    %16 = vector.broadcast %4 : i32 to vector<1x256xi32>
    %17 = arith.addi %6, %16 : vector<1x256xi32>
    %18 = arith.select %15, %17, %6 : vector<1x256xi1>, vector<1x256xi32>
    %c0_i32_6 = arith.constant 0 : i32
    %19 = vector.broadcast %c0_i32_6 : i32 to vector<1x256xi32>
    %20 = arith.cmpi eq, %18, %19 : vector<1x256xi32>
    %c1_i32_7 = arith.constant 1 : i32
    %21 = tpu.dynamic_rotate %0 by %c1_i32_7 dim 1 : vector<8x256xf32>, i32 -> vector<8x256xf32>
    %cst = arith.constant 0.000000e+00 : f32
    %22 = vector.shape_cast %20 : vector<1x256xi1> to vector<1x256xi1>
    %23 = vector.broadcast %22 : vector<1x256xi1> to vector<8x256xi1>
    %24 = vector.broadcast %cst : f32 to vector<8x256xf32>
    %25 = arith.select %23, %24, %21 : vector<8x256xi1>, vector<8x256xf32>
    %c127_i32 = arith.constant 127 : i32
    %26 = vector.broadcast %c127_i32 : i32 to vector<1x256xi32>
    %27 = arith.cmpi eq, %18, %26 : vector<1x256xi32>
    %c255_i32 = arith.constant 255 : i32
    %28 = tpu.dynamic_rotate %0 by %c255_i32 dim 1 : vector<8x256xf32>, i32 -> vector<8x256xf32>
    %cst_8 = arith.constant 0.000000e+00 : f32
    %29 = vector.shape_cast %27 : vector<1x256xi1> to vector<1x256xi1>
    %30 = vector.broadcast %29 : vector<1x256xi1> to vector<8x256xi1>
    %31 = vector.broadcast %cst_8 : f32 to vector<8x256xf32>
    %32 = arith.select %30, %31, %28 : vector<8x256xi1>, vector<8x256xf32>
    %33 = tpu.concatenate %25, %0, %32 in 0 : vector<8x256xf32>, vector<8x256xf32>, vector<8x256xf32> -> vector<24x256xf32>
    %34 = arith.truncf %1 : vector<8x24xf32> to vector<8x24xbf16>
    %35 = arith.truncf %33 : vector<24x256xf32> to vector<24x256xbf16>
    %cst_9 = arith.constant dense<0.000000e+00> : vector<8x256xf32>
    %36 = tpu.matmul %34, %35, %cst_9 {dimension_numbers = #tpu.dot_dimension_numbers<[1], [0], [0], [1], [0, 0, 1, 1], [], []>} : vector<8x24xbf16>, vector<24x256xbf16>, vector<8x256xf32> -> vector<8x256xf32>
    %c0_10 = arith.constant 0 : index
    %c0_11 = arith.constant 0 : index
    %37 = vector.load %arg3[%c0_10, %c0_11] : memref<8x256xf32, #tpu.memory_space<vmem>>, vector<8x256xf32>
    tpu.vector_store %arg3[%c0_10, %c0_11], %36 {strides = array<i32>} : memref<8x256xf32, #tpu.memory_space<vmem>>, vector<8x256xf32>,
    %cst_12 = arith.constant dense<0.000000e+00> : vector<8xf32>
    %38 = vector.multi_reduction <add>, %36, %cst_12 [1] : vector<8x256xf32> to vector<8xf32>
    %39 = vector.shape_cast %38 : vector<8xf32> to vector<8x1xf32>
    %40 = vector.shape_cast %39 : vector<8x1xf32> to vector<1x8x1xf32>
    %c0_13 = arith.constant 0 : index
    %c0_14 = arith.constant 0 : index
    %c0_15 = arith.constant 0 : index
    %41 = vector.load %arg4[%c0_13, %c0_14, %c0_15] : memref<1x8x1xf32, #tpu.memory_space<vmem>>, vector<1x8x1xf32>
    tpu.vector_store %arg4[%c0_13, %c0_14, %c0_15], %40 {strides = array<i32>} : memref<1x8x1xf32, #tpu.memory_space<vmem>>, vector<1x8x1xf32>,
    %42 = arith.mulf %36, %36 : vector<8x256xf32>
    %cst_16 = arith.constant dense<0.000000e+00> : vector<8xf32>
    %43 = vector.multi_reduction <add>, %42, %cst_16 [1] : vector<8x256xf32> to vector<8xf32>
    %44 = vector.shape_cast %43 : vector<8xf32> to vector<8x1xf32>
    %45 = vector.shape_cast %44 : vector<8x1xf32> to vector<1x8x1xf32>
    %c0_17 = arith.constant 0 : index
    %c0_18 = arith.constant 0 : index
    %c0_19 = arith.constant 0 : index
    %46 = vector.load %arg5[%c0_17, %c0_18, %c0_19] : memref<1x8x1xf32, #tpu.memory_space<vmem>>, vector<1x8x1xf32>
    tpu.vector_store %arg5[%c0_17, %c0_18, %c0_19], %45 {strides = array<i32>} : memref<1x8x1xf32, #tpu.memory_space<vmem>>, vector<1x8x1xf32>,
    return
  }
  func.func @transform_0(%arg0: i32) -> (i32, i32) {
    %c0_i32 = arith.constant 0 : i32
    %c0_i32_0 = arith.constant 0 : i32
    return %c0_i32, %arg0 : i32, i32
  }
  func.func @transform_1(%arg0: i32) -> (i32, i32) {
    %c0_i32 = arith.constant 0 : i32
    %c0_i32_0 = arith.constant 0 : i32
    %c0_i32_1 = arith.constant 0 : i32
    return %c0_i32, %c0_i32_0 : i32, i32
  }
  func.func @transform_2(%arg0: i32) -> (i32, i32) {
    %c0_i32 = arith.constant 0 : i32
    %c0_i32_0 = arith.constant 0 : i32
    return %c0_i32, %arg0 : i32, i32
  }
  func.func @transform_3(%arg0: i32) -> (i32, i32, i32) {
    %c0_i32 = arith.constant 0 : i32
    %c0_i32_0 = arith.constant 0 : i32
    %c0_i32_1 = arith.constant 0 : i32
    return %arg0, %c0_i32, %c0_i32_0 : i32, i32, i32
  }
  func.func @transform_4(%arg0: i32) -> (i32, i32, i32) {
    %c0_i32 = arith.constant 0 : i32
    %c0_i32_0 = arith.constant 0 : i32
    %c0_i32_1 = arith.constant 0 : i32
    return %arg0, %c0_i32, %c0_i32_0 : i32, i32, i32
  }
}

</mosaic_0001>

<bundles_post_ra>
// kernel: tpu_custom_call.1
= control target key start
LH: loop header
LB: loop body
LE: loop exit
PB: predicated region body
PF: predicated region fallthrough
CT: control target
= control target key end

     0   :  { %10 = vsyncpa [#allocation3], 0  ;;  %s337_s0 = inlined_call_operand.hbm [shape: f32[8,256], index: 0, kind: input, shape index: {}]   ;;  %s338_s1 = inlined_call_operand.hbm [shape: f32[8,24], index: 1, kind: input, shape index: {}]   ;;  %s339_s2 = inlined_call_operand.hbm [shape: f32[8,256], index: 2, kind: output, shape index: {0}]   ;;  %s340_s3 = inlined_call_operand.vmem [shape: f32[1,8,1], index: 3, kind: output, shape index: {1}]   ;;  %s341_s4 = inlined_call_operand.vmem [shape: f32[1,8,1], index: 4, kind: output, shape index: {2}]  }
   0x1   :  { %11 = vsyncpa [#allocation6], 0 }
   0x2   :  { %12 = vsyncpa [#allocation4], 0  ;;  %s18_s17 = sshll.u32 %s337_s0, 4  ;;  %s291_s18 = smov [#allocation2]   ;;  %s19_s17 = int_to_ptr.hbm [resolvable:$true] %s18_s17 }
   0x3   :  { %s20_s19 = sshll.u32 %s291_s18, 4  ;;  %s29_s22 = sshll.u32 %s338_s1, 4  ;;  %s21_s19 = int_to_ptr.vmem [resolvable:$true] %s20_s19  ;;  %s30_s22 = int_to_ptr.hbm [resolvable:$true] %s29_s22 }
   0x4   :  { %23 = dma.hbm_to_vmem [thread:$0]  %s19_s17, 256, %s21_s19, [#allocation3]  }
   0x5   :  { %s292_s23 = smov [#allocation5]  }
   0x6   :  { %s31_s24 = sshll.u32 %s292_s23, 4  ;;  %s32_s24 = int_to_ptr.vmem [resolvable:$true] %s31_s24 }
   0x7   :  { %34 = dma.hbm_to_vmem [thread:$0]  %s30_s22, 128, %s32_s24, [#allocation6]  }
   0x8   :  { %285 = dma.done.wait [#allocation3], 256  }
   0x9   :  { %286 = vsyncadd [#allocation3], 4294967040 }
   0xa   :  { %287 = dma.done.wait [#allocation6], 128  }
   0xb   :  { %288 = vsyncadd [#allocation6], 4294967168  ;;  %v44_v0 = vld [vmem:[#allocation2] sm:$0xff]  ;;  %v45_v1 = vld [vmem:[#allocation2 + $0x8] sm:$0xff]  ;;  %s293_s0 = smov 127   ;;  %s294_s25 = smov 1   ;;  %v47_v3 = vlaneseq }
   0xc   :  { %v203_v2 = vpack.i.bf16 %v45_v1, %v44_v0  ;;  %vm113_vm3 = vcmask 1043456   ;;  %vm295_vm7 = vmmov 1   ;;  %v46_v21 = vld [vmem:[#allocation5] sm:$0xff]  ;;  %vm109_vm10 = vcmask 195584   ;;  %s296_s1 = smov [#allocation7]   ;;  %s166_s29 = sshll.u32 %s339_s2, 4  ;;  %s167_s29 = int_to_ptr.hbm [resolvable:$true] %s166_s29 }
   0xd   :  { %v48_v4 = vand.u32 127, %v47_v3  ;;  %v104_v26 = vpack.c.bf16 %v46_v21, %v46_v21  ;;  %s164_s26 = sshll.u32 %s296_s1, 4  ;;  %vm151_vm11 = vcmask 7168   ;;  %s165_s26 = int_to_ptr.vmem [resolvable:$true] %s164_s26 }
   0xe   :  { %204 = vrot.lane.b32.xlu0 %v203_v2, %s293_s0 }
   0xf   :  { %v49_v5 = vadd.s32 128, %v48_v4  ;;  %vm95_vm0 = vcmp.lt.s32.totalorder %v48_v4, 127  ;;  %vm89_vm1 = vcmp.eq.s32.totalorder %v48_v4, 127  ;;  %vm195_vm4 = vcmp.ne.s32.totalorder %v48_v4, 0 }
  0x10   :  { %vm80_vm5 = vcmp.lt.s32.totalorder %v48_v4, 1  ;;  %vm186_vm8 = vmpackc.low %vm295_vm7, %vm195_vm4 }
  0x11   :  { %v61_v6 = vand.u32 127, %v49_v5 }
  0x13   :  { %vm90_vm2 = vcmp.eq.s32.totalorder %v61_v6, 127  ;;  %vm196_vm6 = vcmp.ne.s32.totalorder %v61_v6, 0 }
  0x14   :  { %vm191_vm9 = vmpackc.low %vm295_vm7, %vm196_vm6 }
  0x16   :  { %209 = vrot.lane.b32.xlu0 %v203_v2, %s294_s25 }
  0x80   :  { %v205_v7 = vpop.permute.xlu0 %204 }
  0x81   :  { %v207_v8 = vunpack.i.h.bf16 %v205_v7  ;;  %v206_v9 = vunpack.i.l.bf16 %v205_v7 }
  0x83   :  { %v96_v10 = vsel %vm95_vm0, %v206_v9, %v207_v8  ;;  %v97_v11 = vsel %vm95_vm0, %v207_v8, %v206_v9 }
  0x84   :  { %v102_v12 = vsel %vm89_vm1, 0.0, %v96_v10  ;;  %v103_v13 = vsel %vm90_vm2, 0.0, %v97_v11 }
  0x85   :  { %v107_v14 = vpack.c.bf16 %v102_v12, %v102_v12  ;;  %v108_v15 = vpack.c.bf16 %v103_v13, %v103_v13 }
  0x87   :  { %v115_v16 = vsel %vm113_vm3, %v107_v14, 0  ;;  %v118_v17 = vsel %vm113_vm3, %v108_v15, 0 }
  0x88   :  { %v210_v18 = vpop.permute.xlu0 %209  ;;  %126 = vmatpush.bf16.msra.mxu0 %v115_v16  ;;  %139 = vmatpush.bf16.msra.mxu1 %v118_v17 }
  0x89   :  { %v212_v19 = vunpack.i.h.bf16 %v210_v18  ;;  %v211_v20 = vunpack.i.l.bf16 %v210_v18 }
  0x8b   :  { %v82_v22 = vsel %vm80_vm5, %v212_v19, %v211_v20  ;;  %v81_v23 = vsel %vm80_vm5, %v211_v20, %v212_v19 }
  0x8c   :  { %v187_v24 = vpack.c.bf16 %v44_v0, %v82_v22  ;;  %v192_v25 = vpack.c.bf16 %v45_v1, %v81_v23 }
  0x8e   :  { %188 = vmatpush.bf16.msk.msra.mxu0 %vm186_vm8, %v187_v24  ;;  %193 = vmatpush.bf16.msk.msra.mxu1 %vm191_vm9, %v192_v25 }
  0x91   :  { %189 = vmatmul.msk.bf16.vlgmr.msra.gmra.mxu0 %vm109_vm10, %v104_v26  ;;  %194 = vmatmul.msk.bf16.vlgmr.msra.gmra.mxu1 %vm109_vm10, %v104_v26 }
 0x10e   :  { %v129_v27 = vpop.f32.mrf.mxu0  ;;  %v142_v28 = vpop.f32.mrf.mxu1 }
 0x10f   :  { %146 = vst [vmem:[#allocation7] sm:$0xff] %v129_v27  ;;  %v148_v29 = vadd.f32 %v142_v28, %v129_v27  ;;  %v153_v30 = vmul.f32 %v129_v27, %v129_v27  ;;  %v154_v31 = vmul.f32 %v142_v28, %v142_v28 }
 0x110   :  { %147 = vst [vmem:[#allocation7 + $0x8] sm:$0xff] %v142_v28 }
 0x111   :  { %149 = vadd.xlane.f32.xlu1 %v148_v29  ;;  %169 = dma.vmem_to_hbm [thread:$0]  %s165_s26, 256, %s167_s29, [#allocation4]   ;;  %v155_v34 = vadd.f32 %v154_v31, %v153_v30 }
 0x116   :  { %v131_v32 = vpop.f32.mrf.mxu0  ;;  %v144_v33 = vpop.f32.mrf.mxu1 }
 0x119   :  { %156 = vadd.xlane.f32.xlu1 %v155_v34 }
 0x184   :  { %v150_v35 = vpop.xlane.xlu1 %149 }
 0x185   :  { %152 = vst.msk [vmem:[%s340_s3] sm:$0xff] %vm151_vm11, %v150_v35 }
 0x18c   :  { %v157_v36 = vpop.xlane.xlu1 %156 }
 0x18d   :  { %158 = vst.msk [vmem:[%s341_s4] sm:$0xff] %vm151_vm11, %v157_v36 }
 0x18e   :  { %289 = dma.done.wait [#allocation4], 256  }
 0x18f   :  { %290 = vsyncadd [#allocation4], 4294967040 }
 0x190   :  { %182 = vsyncpa [#allocation3], 1 }
 0x191   :  { %183 = vsyncpa [#allocation6], 1 }
 0x192   :  { %184 = vsyncpa [#allocation4], 1 }

</bundles_post_ra>
